<compile_context>
chip_gen: v7x
topology: tpu7x:2x2x1
jax: 0.10.0
libtpu: 0.0.40
codegen_flags: <defaults>
</compile_context>

<pallas_src>
import jax
import jax.numpy as jnp
from jax.experimental import pallas as pl
from jax.experimental.pallas import tpu as pltpu

_LANES = 128
_BF16_SUBLANES = 16


def gin_conv_kernel(adj_ref, x_ref, w1_ref, b1_ref, w2_ref, b2_ref, out_ref):
    """One grid step = a block of `tile_rows // graph_size` whole graphs.

    adj_ref : (tile_rows, tile_rows) bf16  block-diagonal kron(I, adj + (1+eps) I)
    x_ref   : (tile_rows, input_dim) bf16  node features for this row block
    w1_ref  : (input_dim, mlp_hidden) bf16
    b1_ref  : (1, mlp_hidden)         f32
    w2_ref  : (mlp_hidden, out_pad)   bf16  (columns >= output_dim are zero)
    b2_ref  : (1, out_pad)            f32
    out_ref : (tile_rows, out_pad)    bf16
    """
    # GIN aggregation for every graph in the block: a single well-shaped MXU matmul
    # against the resident block-diagonal adjacency (f32 accumulation).
    agg = jnp.dot(adj_ref[...], x_ref[...], preferred_element_type=jnp.float32)

    # MLP: Linear -> Dropout(eval: identity) -> ReLU -> Linear.
    # TODO(synk): training-mode dropout (p=0.5) omitted; eval-mode identity used.
    h = jnp.dot(agg.astype(jnp.bfloat16), w1_ref[...],
                preferred_element_type=jnp.float32) + b1_ref[...]
    h = jnp.maximum(h, 0.0)                      # bias/ReLU stay f32 (v5e-safe)
    y = jnp.dot(h.astype(jnp.bfloat16), w2_ref[...],
                preferred_element_type=jnp.float32) + b2_ref[...]

    out_ref[...] = y.astype(out_ref.dtype)


def _round_up(x, m):
    return ((x + m - 1) // m) * m


def _device_kind():
    try:
        return jax.devices()[0].device_kind.lower()
    except Exception:
        return ""


def _vmem_bytes(tile_rows, input_dim, mlp_hidden, out_pad):
    """Approximate per-step VMEM footprint: single-buffered residents + double-buffered
    streaming x/out blocks + f32 kernel intermediates (agg, h, y)."""
    bf16, f32 = 2, 4
    resident = (tile_rows * tile_rows * bf16                    # block-diag adjacency
                + input_dim * mlp_hidden * bf16                 # W1
                + mlp_hidden * out_pad * bf16                   # W2
                + (mlp_hidden + out_pad) * f32)                 # biases
    streaming = 2 * tile_rows * (input_dim + out_pad) * bf16    # double-buffered x / out
    interm = tile_rows * (input_dim + 2 * mlp_hidden + out_pad) * f32
    return resident + streaming + interm


def _choose_graphs_per_step(b_size, graph_size, target_rows, two_core,
                            vmem_budget, input_dim, mlp_hidden, out_pad):
    """Graphs per grid step: ~target_rows rows per tile, bf16-sublane aligned, fitting
    the VMEM budget.  On 2-TC chips (v7x) keep >= 2 grid steps if tiles stay >= 256 rows."""
    gps = max(1, min(b_size, max(1, target_rows // graph_size)))
    n_steps = -(-b_size // gps)
    if two_core and n_steps < 2 and ((gps + 1) // 2) * graph_size >= 256:
        gps = (gps + 1) // 2
    while True:
        # tile_rows must be a multiple of 16 (bf16 sublane packing); the batch
        # zero-padding below absorbs any extra graph this adds.
        gps_aligned = gps + 1 if (gps * graph_size) % _BF16_SUBLANES else gps
        tile_rows = gps_aligned * graph_size
        fits = _vmem_bytes(tile_rows, input_dim, mlp_hidden, out_pad) <= vmem_budget
        if fits or gps == 1:
            return gps_aligned
        gps = max(1, gps // 2)


def gin_conv_forward(adj, x, eps, w1, b1, w2, b2, b_size, graph_size,
                     target_rows=1024, out_dtype=jnp.bfloat16):
    N, input_dim = x.shape
    mlp_hidden = w1.shape[1]
    output_dim = w2.shape[1]
    assert N == b_size * graph_size, "all rows of x must belong to a graph"
    assert input_dim == w1.shape[0]
    # The PyTorch module stages the aggregation in an (N, output_dim) buffer that is then
    # fed to Linear(input_dim, ...), so it genuinely requires this equality.
    assert input_dim == output_dim, "GIN_conv requires input_dim == output_dim"
    assert graph_size % 8 == 0, "graph_size must be a multiple of 8 (sublane tiling)"
    # TODO(synk): support graph_size not a multiple of 8 via per-graph row padding.

    kind = _device_kind()
    two_core = "v7" in kind                       # v7x: 2 TensorCores, 64 MiB VMEM
    physical_vmem = (64 << 20) if two_core else (128 << 20)
    vmem_budget = physical_vmem // 2              # headroom for compiler scratch

    out_pad = _round_up(output_dim, _LANES)       # lane-dense (unmasked) output stores
    gps = _choose_graphs_per_step(b_size, graph_size, target_rows, two_core,
                                  vmem_budget, input_dim, mlp_hidden, out_pad)
    tile_rows = gps * graph_size
    b_pad = _round_up(b_size, gps)                # zero-pad awkward (e.g. prime) batches
    n_rows = b_pad * graph_size
    grid = (b_pad // gps,)

    # Fold (1 + eps) into the adjacency with jnp arithmetic (eps stays traceable), then
    # build the block-diagonal adjacency for one row block; bf16, VMEM-resident.
    eps = jnp.asarray(eps, jnp.float32)
    adj_eff = adj.astype(jnp.float32) + (1.0 + eps) * jnp.eye(graph_size,
                                                              dtype=jnp.float32)
    adj_bd = jnp.kron(jnp.eye(gps, dtype=jnp.float32), adj_eff).astype(jnp.bfloat16)

    # Zero-padded W2/b2 columns keep output stores lane-dense; sliced off after the call.
    pad_c = out_pad - output_dim
    w2_p = jnp.pad(w2, ((0, 0), (0, pad_c))) if pad_c else w2
    b2_p = jnp.pad(b2, ((0, pad_c),)) if pad_c else b2

    w1_bf = w1.astype(jnp.bfloat16)
    w2_bf = w2_p.astype(jnp.bfloat16)
    b1_2d = b1.reshape(1, mlp_hidden).astype(jnp.float32)
    b2_2d = b2_p.reshape(1, out_pad).astype(jnp.float32)

    x_bf = x.astype(jnp.bfloat16)                 # halve the dominant input HBM stream
    if n_rows > N:
        x_bf = jnp.pad(x_bf, ((0, n_rows - N), (0, 0)))

    # Advisory cost for XLA scheduling around the custom call.
    flops = 2 * n_rows * (tile_rows * input_dim          # block-diag aggregation
                          + input_dim * mlp_hidden       # Linear1
                          + mlp_hidden * out_pad)        # Linear2
    bytes_accessed = (x_bf.size * 2 + n_rows * out_pad * 2 + adj_bd.size * 2
                      + w1_bf.size * 2 + w2_bf.size * 2 + (mlp_hidden + out_pad) * 4)
    cost = pl.CostEstimate(flops=int(flops), transcendentals=0,
                           bytes_accessed=int(bytes_accessed))

    footprint = _vmem_bytes(tile_rows, input_dim, mlp_hidden, out_pad)
    vmem_limit = int(min(physical_vmem - (16 << 20),
                         max(32 << 20, footprint + footprint // 2)))

    def build(resident_kwargs):
        def const_spec(shape):
            return pl.BlockSpec(shape, lambda i: (0, 0), **resident_kwargs)

        grid_spec = pltpu.PrefetchScalarGridSpec(
            num_scalar_prefetch=0,
            grid=grid,
            in_specs=[
                const_spec((tile_rows, tile_rows)),                       # block-diag adj
                pl.BlockSpec((tile_rows, input_dim), lambda i: (i, 0)),   # x row block
                const_spec((input_dim, mlp_hidden)),                      # W1 (resident)
                const_spec((1, mlp_hidden)),                              # b1 (resident)
                const_spec((mlp_hidden, out_pad)),                        # W2 (resident)
                const_spec((1, out_pad)),                                 # b2 (resident)
            ],
            out_specs=pl.BlockSpec((tile_rows, out_pad), lambda i: (i, 0)),
        )
        return pl.pallas_call(
            gin_conv_kernel,
            out_shape=jax.ShapeDtypeStruct((n_rows, out_pad), jnp.bfloat16),
            grid_spec=grid_spec,
            compiler_params=pltpu.CompilerParams(
                dimension_semantics=("parallel",),
                vmem_limit_bytes=vmem_limit),
            cost_estimate=cost,
        )

    args = (adj_bd, x_bf, w1_bf, b1_2d, w2_bf, b2_2d)
    try:
        # Resident (constant-index) operands single-buffered -> more VMEM for row blocks.
        out = build(dict(pipeline_mode=pl.Buffered(1)))(*args)
    except Exception:
        # Fallback for Pallas versions without BlockSpec.pipeline_mode support.
        out = build({})(*args)

    out = out[:N, :output_dim]                    # drop row / lane padding (bf16: cheap)
    return out.astype(out_dtype)


def gin_conv_reference(adj, x, eps, w1, b1, w2, b2, b_size, graph_size):
    """Pure-JAX f32 reference mirroring the PyTorch forward (eval mode)."""
    N = x.shape[0]
    out = jnp.zeros((N, w2.shape[1]), jnp.float32)
    accum = 0
    for _ in range(b_size):
        x_i = x[accum:accum + graph_size]
        x_i = (1.0 + eps) * x_i + adj @ x_i
        out = out.at[accum:accum + graph_size].set(x_i)
        accum += graph_size
    h = jnp.maximum(out @ w1 + b1, 0.0)
    return h @ w2 + b2


if __name__ == "__main__":
    # Small shapes consistent with the module (input_dim == output_dim required).
    b_size = 8
    graph_size = 16
    input_dim = 64
    output_dim = 64
    mlp_hidden = 128
    N = b_size * graph_size

    key = jax.random.PRNGKey(0)
    k_adj, k_x, k_w1, k_b1, k_w2, k_b2 = jax.random.split(key, 6)

    # Shared dense adjacency (same matrix for every graph, as in the module).
    adj = (jax.random.uniform(k_adj, (graph_size, graph_size)) > 0.7).astype(jnp.float32)
    x = jax.random.normal(k_x, (N, input_dim), dtype=jnp.float32)

    # Deterministic MLP parameter init (uniform, PyTorch-Linear-style scaling).
    lim1 = 1.0 / (input_dim ** 0.5)
    lim2 = 1.0 / (mlp_hidden ** 0.5)
    w1 = jax.random.uniform(k_w1, (input_dim, mlp_hidden), minval=-lim1, maxval=lim1,
                            dtype=jnp.float32)
    b1 = jax.random.uniform(k_b1, (mlp_hidden,), minval=-lim1, maxval=lim1,
                            dtype=jnp.float32)
    w2 = jax.random.uniform(k_w2, (mlp_hidden, output_dim), minval=-lim2, maxval=lim2,
                            dtype=jnp.float32)
    b2 = jax.random.uniform(k_b2, (output_dim,), minval=-lim2, maxval=lim2,
                            dtype=jnp.float32)

    eps = 0.0  # train_eps=True -> nn.init.zeros_(self.eps)

    out = gin_conv_forward(adj, x, eps, w1, b1, w2, b2, b_size, graph_size)
    out = jax.block_until_ready(out)

    ref = gin_conv_reference(adj, x, eps, w1, b1, w2, b2, b_size, graph_size)
    assert out.shape == (N, output_dim)
    # bf16 activations/weights/output give ~1e-2 relative error vs the f32 reference.
    assert jnp.allclose(out.astype(jnp.float32), ref, atol=3e-2, rtol=3e-2), \
        "mismatch vs reference"

    print("KERNEL_OK")
</pallas_src>

<mosaic_0001>
module attributes {stable_mosaic.version = 11 : i64} {
  func.func @gin_conv_kernel(%arg0: i32, %arg1: memref<128x128xbf16, #tpu.memory_space<vmem>>, %arg2: memref<128x64xbf16, #tpu.memory_space<vmem>>, %arg3: memref<64x128xbf16, #tpu.memory_space<vmem>>, %arg4: memref<1x128xf32, #tpu.memory_space<vmem>>, %arg5: memref<128x128xbf16, #tpu.memory_space<vmem>>, %arg6: memref<1x128xf32, #tpu.memory_space<vmem>>, %arg7: memref<128x128xbf16, #tpu.memory_space<vmem>>) attributes {dimension_semantics = [#tpu.dimension_semantics<parallel>], iteration_bounds = array<i64: 1>, scalar_prefetch = 0 : i64, scratch_operands = 0 : i64, tpu.core_type = #tpu.core_type<tc>, window_params = [{pipeline_mode = #tpu.pipeline_mode<synchronous>, transform_indices = @transform_0, window_bounds = array<i64: 128, 128>}, {transform_indices = @transform_1, window_bounds = array<i64: 128, 64>}, {pipeline_mode = #tpu.pipeline_mode<synchronous>, transform_indices = @transform_2, window_bounds = array<i64: 64, 128>}, {pipeline_mode = #tpu.pipeline_mode<synchronous>, transform_indices = @transform_3, window_bounds = array<i64: 1, 128>}, {pipeline_mode = #tpu.pipeline_mode<synchronous>, transform_indices = @transform_4, window_bounds = array<i64: 128, 128>}, {pipeline_mode = #tpu.pipeline_mode<synchronous>, transform_indices = @transform_5, window_bounds = array<i64: 1, 128>}, {transform_indices = @transform_6, window_bounds = array<i64: 128, 128>}]} {
    %c0 = arith.constant 0 : index
    %c0_0 = arith.constant 0 : index
    %0 = vector.load %arg1[%c0, %c0_0] : memref<128x128xbf16, #tpu.memory_space<vmem>>, vector<128x128xbf16>
    %c0_1 = arith.constant 0 : index
    %c0_2 = arith.constant 0 : index
    %1 = vector.load %arg2[%c0_1, %c0_2] : memref<128x64xbf16, #tpu.memory_space<vmem>>, vector<128x64xbf16>
    %cst = arith.constant dense<0.000000e+00> : vector<128x64xf32>
    %2 = tpu.matmul %0, %1, %cst {dimension_numbers = #tpu.dot_dimension_numbers<[1], [0], [0], [1], [0, 0, 1, 1], [], []>} : vector<128x128xbf16>, vector<128x64xbf16>, vector<128x64xf32> -> vector<128x64xf32>
    %3 = arith.truncf %2 : vector<128x64xf32> to vector<128x64xbf16>
    %c0_3 = arith.constant 0 : index
    %c0_4 = arith.constant 0 : index
    %4 = vector.load %arg3[%c0_3, %c0_4] : memref<64x128xbf16, #tpu.memory_space<vmem>>, vector<64x128xbf16>
    %cst_5 = arith.constant dense<0.000000e+00> : vector<128x128xf32>
    %5 = tpu.matmul %3, %4, %cst_5 {dimension_numbers = #tpu.dot_dimension_numbers<[1], [0], [0], [1], [0, 0, 1, 1], [], []>} : vector<128x64xbf16>, vector<64x128xbf16>, vector<128x128xf32> -> vector<128x128xf32>
    %c0_6 = arith.constant 0 : index
    %c0_7 = arith.constant 0 : index
    %6 = vector.load %arg4[%c0_6, %c0_7] : memref<1x128xf32, #tpu.memory_space<vmem>>, vector<1x128xf32>
    %7 = vector.broadcast %6 : vector<1x128xf32> to vector<128x128xf32>
    %8 = arith.addf %5, %7 : vector<128x128xf32>
    %cst_8 = arith.constant 0.000000e+00 : f32
    %9 = vector.broadcast %cst_8 : f32 to vector<128x128xf32>
    %10 = arith.maximumf %8, %9 : vector<128x128xf32>
    %11 = arith.truncf %10 : vector<128x128xf32> to vector<128x128xbf16>
    %c0_9 = arith.constant 0 : index
    %c0_10 = arith.constant 0 : index
    %12 = vector.load %arg5[%c0_9, %c0_10] : memref<128x128xbf16, #tpu.memory_space<vmem>>, vector<128x128xbf16>
    %cst_11 = arith.constant dense<0.000000e+00> : vector<128x128xf32>
    %13 = tpu.matmul %11, %12, %cst_11 {dimension_numbers = #tpu.dot_dimension_numbers<[1], [0], [0], [1], [0, 0, 1, 1], [], []>} : vector<128x128xbf16>, vector<128x128xbf16>, vector<128x128xf32> -> vector<128x128xf32>
    %c0_12 = arith.constant 0 : index
    %c0_13 = arith.constant 0 : index
    %14 = vector.load %arg6[%c0_12, %c0_13] : memref<1x128xf32, #tpu.memory_space<vmem>>, vector<1x128xf32>
    %15 = vector.broadcast %14 : vector<1x128xf32> to vector<128x128xf32>
    %16 = arith.addf %13, %15 : vector<128x128xf32>
    %17 = arith.truncf %16 : vector<128x128xf32> to vector<128x128xbf16>
    %c0_14 = arith.constant 0 : index
    %c0_15 = arith.constant 0 : index
    %18 = vector.load %arg7[%c0_14, %c0_15] : memref<128x128xbf16, #tpu.memory_space<vmem>>, vector<128x128xbf16>
    tpu.vector_store %arg7[%c0_14, %c0_15], %17 {strides = array<i32>} : memref<128x128xbf16, #tpu.memory_space<vmem>>, vector<128x128xbf16>,
    return
  }
  func.func @transform_0(%arg0: i32) -> (i32, i32) {
    %c0_i32 = arith.constant 0 : i32
    %c0_i32_0 = arith.constant 0 : i32
    %c0_i32_1 = arith.constant 0 : i32
    return %c0_i32, %c0_i32_0 : i32, i32
  }
  func.func @transform_1(%arg0: i32) -> (i32, i32) {
    %c0_i32 = arith.constant 0 : i32
    %c0_i32_0 = arith.constant 0 : i32
    return %arg0, %c0_i32 : i32, i32
  }
  func.func @transform_2(%arg0: i32) -> (i32, i32) {
    %c0_i32 = arith.constant 0 : i32
    %c0_i32_0 = arith.constant 0 : i32
    %c0_i32_1 = arith.constant 0 : i32
    return %c0_i32, %c0_i32_0 : i32, i32
  }
  func.func @transform_3(%arg0: i32) -> (i32, i32) {
    %c0_i32 = arith.constant 0 : i32
    %c0_i32_0 = arith.constant 0 : i32
    %c0_i32_1 = arith.constant 0 : i32
    return %c0_i32, %c0_i32_0 : i32, i32
  }
  func.func @transform_4(%arg0: i32) -> (i32, i32) {
    %c0_i32 = arith.constant 0 : i32
    %c0_i32_0 = arith.constant 0 : i32
    %c0_i32_1 = arith.constant 0 : i32
    return %c0_i32, %c0_i32_0 : i32, i32
  }
  func.func @transform_5(%arg0: i32) -> (i32, i32) {
    %c0_i32 = arith.constant 0 : i32
    %c0_i32_0 = arith.constant 0 : i32
    %c0_i32_1 = arith.constant 0 : i32
    return %c0_i32, %c0_i32_0 : i32, i32
  }
  func.func @transform_6(%arg0: i32) -> (i32, i32) {
    %c0_i32 = arith.constant 0 : i32
    %c0_i32_0 = arith.constant 0 : i32
    return %arg0, %c0_i32 : i32, i32
  }
}

module attributes {stable_mosaic.version = 11 : i64} {
  func.func @gin_conv_kernel(%arg0: i32, %arg1: memref<128x128xbf16, #tpu.memory_space<vmem>>, %arg2: memref<128x64xbf16, #tpu.memory_space<vmem>>, %arg3: memref<64x128xbf16, #tpu.memory_space<vmem>>, %arg4: memref<1x128xf32, #tpu.memory_space<vmem>>, %arg5: memref<128x128xbf16, #tpu.memory_space<vmem>>, %arg6: memref<1x128xf32, #tpu.memory_space<vmem>>, %arg7: memref<128x128xbf16, #tpu.memory_space<vmem>>) attributes {dimension_semantics = [#tpu.dimension_semantics<parallel>], iteration_bounds = array<i64: 1>, scalar_prefetch = 0 : i64, scratch_operands = 0 : i64, tpu.core_type = #tpu.core_type<tc>, window_params = [{pipeline_mode = #tpu.pipeline_mode<synchronous>, transform_indices = @transform_0, window_bounds = array<i64: 128, 128>}, {transform_indices = @transform_1, window_bounds = array<i64: 128, 64>}, {pipeline_mode = #tpu.pipeline_mode<synchronous>, transform_indices = @transform_2, window_bounds = array<i64: 64, 128>}, {pipeline_mode = #tpu.pipeline_mode<synchronous>, transform_indices = @transform_3, window_bounds = array<i64: 1, 128>}, {pipeline_mode = #tpu.pipeline_mode<synchronous>, transform_indices = @transform_4, window_bounds = array<i64: 128, 128>}, {pipeline_mode = #tpu.pipeline_mode<synchronous>, transform_indices = @transform_5, window_bounds = array<i64: 1, 128>}, {transform_indices = @transform_6, window_bounds = array<i64: 128, 128>}]} {
    %c0 = arith.constant 0 : index
    %c0_0 = arith.constant 0 : index
    %0 = vector.load %arg1[%c0, %c0_0] : memref<128x128xbf16, #tpu.memory_space<vmem>>, vector<128x128xbf16>
    %c0_1 = arith.constant 0 : index
    %c0_2 = arith.constant 0 : index
    %1 = vector.load %arg2[%c0_1, %c0_2] : memref<128x64xbf16, #tpu.memory_space<vmem>>, vector<128x64xbf16>
    %cst = arith.constant dense<0.000000e+00> : vector<128x64xf32>
    %2 = tpu.matmul %0, %1, %cst {dimension_numbers = #tpu.dot_dimension_numbers<[1], [0], [0], [1], [0, 0, 1, 1], [], []>} : vector<128x128xbf16>, vector<128x64xbf16>, vector<128x64xf32> -> vector<128x64xf32>
    %3 = arith.truncf %2 : vector<128x64xf32> to vector<128x64xbf16>
    %c0_3 = arith.constant 0 : index
    %c0_4 = arith.constant 0 : index
    %4 = vector.load %arg3[%c0_3, %c0_4] : memref<64x128xbf16, #tpu.memory_space<vmem>>, vector<64x128xbf16>
    %cst_5 = arith.constant dense<0.000000e+00> : vector<128x128xf32>
    %5 = tpu.matmul %3, %4, %cst_5 {dimension_numbers = #tpu.dot_dimension_numbers<[1], [0], [0], [1], [0, 0, 1, 1], [], []>} : vector<128x64xbf16>, vector<64x128xbf16>, vector<128x128xf32> -> vector<128x128xf32>
    %c0_6 = arith.constant 0 : index
    %c0_7 = arith.constant 0 : index
    %6 = vector.load %arg4[%c0_6, %c0_7] : memref<1x128xf32, #tpu.memory_space<vmem>>, vector<1x128xf32>
    %7 = vector.broadcast %6 : vector<1x128xf32> to vector<128x128xf32>
    %8 = arith.addf %5, %7 : vector<128x128xf32>
    %cst_8 = arith.constant 0.000000e+00 : f32
    %9 = vector.broadcast %cst_8 : f32 to vector<128x128xf32>
    %10 = arith.maximumf %8, %9 : vector<128x128xf32>
    %11 = arith.truncf %10 : vector<128x128xf32> to vector<128x128xbf16>
    %c0_9 = arith.constant 0 : index
    %c0_10 = arith.constant 0 : index
    %12 = vector.load %arg5[%c0_9, %c0_10] : memref<128x128xbf16, #tpu.memory_space<vmem>>, vector<128x128xbf16>
    %cst_11 = arith.constant dense<0.000000e+00> : vector<128x128xf32>
    %13 = tpu.matmul %11, %12, %cst_11 {dimension_numbers = #tpu.dot_dimension_numbers<[1], [0], [0], [1], [0, 0, 1, 1], [], []>} : vector<128x128xbf16>, vector<128x128xbf16>, vector<128x128xf32> -> vector<128x128xf32>
    %c0_12 = arith.constant 0 : index
    %c0_13 = arith.constant 0 : index
    %14 = vector.load %arg6[%c0_12, %c0_13] : memref<1x128xf32, #tpu.memory_space<vmem>>, vector<1x128xf32>
    %15 = vector.broadcast %14 : vector<1x128xf32> to vector<128x128xf32>
    %16 = arith.addf %13, %15 : vector<128x128xf32>
    %17 = arith.truncf %16 : vector<128x128xf32> to vector<128x128xbf16>
    %c0_14 = arith.constant 0 : index
    %c0_15 = arith.constant 0 : index
    %18 = vector.load %arg7[%c0_14, %c0_15] : memref<128x128xbf16, #tpu.memory_space<vmem>>, vector<128x128xbf16>
    tpu.vector_store %arg7[%c0_14, %c0_15], %17 {strides = array<i32>} : memref<128x128xbf16, #tpu.memory_space<vmem>>, vector<128x128xbf16>,
    return
  }
  func.func @transform_0(%arg0: i32) -> (i32, i32) {
    %c0_i32 = arith.constant 0 : i32
    %c0_i32_0 = arith.constant 0 : i32
    %c0_i32_1 = arith.constant 0 : i32
    return %c0_i32, %c0_i32_0 : i32, i32
  }
  func.func @transform_1(%arg0: i32) -> (i32, i32) {
    %c0_i32 = arith.constant 0 : i32
    %c0_i32_0 = arith.constant 0 : i32
    return %arg0, %c0_i32 : i32, i32
  }
  func.func @transform_2(%arg0: i32) -> (i32, i32) {
    %c0_i32 = arith.constant 0 : i32
    %c0_i32_0 = arith.constant 0 : i32
    %c0_i32_1 = arith.constant 0 : i32
    return %c0_i32, %c0_i32_0 : i32, i32
  }
  func.func @transform_3(%arg0: i32) -> (i32, i32) {
    %c0_i32 = arith.constant 0 : i32
    %c0_i32_0 = arith.constant 0 : i32
    %c0_i32_1 = arith.constant 0 : i32
    return %c0_i32, %c0_i32_0 : i32, i32
  }
  func.func @transform_4(%arg0: i32) -> (i32, i32) {
    %c0_i32 = arith.constant 0 : i32
    %c0_i32_0 = arith.constant 0 : i32
    %c0_i32_1 = arith.constant 0 : i32
    return %c0_i32, %c0_i32_0 : i32, i32
  }
  func.func @transform_5(%arg0: i32) -> (i32, i32) {
    %c0_i32 = arith.constant 0 : i32
    %c0_i32_0 = arith.constant 0 : i32
    %c0_i32_1 = arith.constant 0 : i32
    return %c0_i32, %c0_i32_0 : i32, i32
  }
  func.func @transform_6(%arg0: i32) -> (i32, i32) {
    %c0_i32 = arith.constant 0 : i32
    %c0_i32_0 = arith.constant 0 : i32
    return %arg0, %c0_i32 : i32, i32
  }
}

</mosaic_0001>

<bundles_post_ra>
// kernel: tpu_custom_call.1
= control target key start
LH: loop header
LB: loop body
LE: loop exit
PB: predicated region body
PF: predicated region fallthrough
CT: control target
= control target key end

     0   :  { %11 = vsyncpa [#allocation3], 0  ;;  %s1210_s0 = inlined_call_operand.vmem [shape: bf16[128,128], index: 0, kind: input, shape index: {}]   ;;  %s1211_s1 = inlined_call_operand.vmem [shape: bf16[128,64], index: 1, kind: input, shape index: {}]   ;;  %s1212_s2 = inlined_call_operand.vmem [shape: bf16[64,128], index: 2, kind: input, shape index: {}]   ;;  %s1213_s3 = inlined_call_operand.vmem [shape: f32[1,128], index: 3, kind: input, shape index: {}]   ;;  %s1214_s4 = inlined_call_operand.hbm [shape: bf16[128,128], index: 4, kind: input, shape index: {}]   ;;  %s1215_s5 = inlined_call_operand.vmem [shape: f32[1,128], index: 5, kind: input, shape index: {}]   ;;  %s1216_s6 = inlined_call_operand.hbm [shape: bf16[128,128], index: 6, kind: output, shape index: {}]  }
   0x1   :  { %12 = vsyncpa [#allocation4], 0  ;;  %s1067_s21 = smov [#allocation2]   ;;  %s1019_s25 = scalar_lea.hbm %s1214_s4, 1024 }
   0x2   :  { %s26_s22 = sshll.u32 %s1067_s21, 4  ;;  %p1020_p0 = scmp.ne.s32.totalorder %s1214_s4, %s1019_s25  ;;  %s27_s22 = int_to_ptr.vmem [resolvable:$true] %s26_s22 }
   0x3   :  { %p1023_p1 = scmp.lt.u32.totalorder %s1019_s25, %s1214_s4 }
   0x5   :  { %p1025_p2 = pnand %p1023_p1, %p1020_p0 }
   0x7   :  { %1028 = shalt.err (!%p1025_p2)
}
   0x8   :  { %s1029_s30 = scalar_lea.vmem %s27_s22, 1024  ;;  %p1034_p4 = scmp.lt.s32.totalorder %s27_s22, %s27_s22 }
   0x9   :  { %p1030_p3 = scmp.ne.s32.totalorder %s27_s22, %s1029_s30  ;;  %p1035_p5 = scmp.lt.s32.totalorder %s1029_s30, %s1029_s30 }
   0xb   :  { %p1036_p6 = por %p1035_p5, %p1034_p4 }
   0xd   :  { %p1037_p7 = pnand %p1036_p6, %p1030_p3 }
   0xf   :  { %1040 = shalt.err (!%p1037_p7)
}
  0x10   :  { %s1068_s7 = smov 64   ;;  %s1069_s8 = smov 4  }
  0x11   :  { %32 = dma.hbm_to_vmem [thread:$0]  %s1214_s4, 1024, %s27_s22, [#allocation3], %s1068_s7, %s1068_s7, %s1069_s8  }
  0x12   :  { %1063 = dma.done.wait [#allocation3], 1024  }
  0x13   :  { %1064 = vsyncadd [#allocation3], 4294966272  ;;  %v991_v0 = vld [vmem:[%s1211_s1] sm:$0xff]   ;;  %v992_v1 = vld [vmem:[%s1211_s1 + $0x8] sm:$0xff]   ;;  %vm311_vm0 = vcmask 523264  }
  0x14   :  { %883 = vmatprep.subr.bf16.mxu0 %v991_v0  ;;  %v993_v2 = vld [vmem:[%s1211_s1 + $0x10] sm:$0xff]   ;;  %v994_v3 = vld [vmem:[%s1211_s1 + $0x18] sm:$0xff]   ;;  %v999_v4 = vld [vmem:[%s1210_s0] sm:$0xff]  }
  0x15   :  { %884 = vmatpush3.bf16.msra.mxu0 %v991_v0  ;;  %899 = vmatprep.mubr.bf16.mxu0 %v999_v4  ;;  %v995_v5 = vld [vmem:[%s1211_s1 + $0x20] sm:$0xff]   ;;  %v996_v6 = vld [vmem:[%s1211_s1 + $0x28] sm:$0xff]   ;;  %v997_v9 = vld [vmem:[%s1211_s1 + $0x30] sm:$0xff]  }
  0x16   :  { %885 = vmatprep.subr.bf16.mxu0 %v992_v1  ;;  %v1007_v7 = vld [vmem:[%s1212_s2] sm:$0xff]   ;;  %v1008_v8 = vld [vmem:[%s1212_s2 + $0x8] sm:$0xff]   ;;  %v1009_v10 = vld [vmem:[%s1212_s2 + $0x10] sm:$0xff]  }
  0x17   :  { %915 = vmatprep.subr.bf16.mxu1 %v1007_v7  ;;  %v998_v11 = vld [vmem:[%s1211_s1 + $0x38] sm:$0xff]   ;;  %v1000_v12 = vld [vmem:[%s1210_s0 + $0x8] sm:$0xff]   ;;  %v1001_v13 = vld [vmem:[%s1210_s0 + $0x10] sm:$0xff]  }
  0x18   :  { %916 = vmatpush3.bf16.msra.mxu1 %v1007_v7  ;;  %v1002_v14 = vld [vmem:[%s1210_s0 + $0x18] sm:$0xff]   ;;  %v1003_v15 = vld [vmem:[%s1210_s0 + $0x20] sm:$0xff]   ;;  %v1004_v16 = vld [vmem:[%s1210_s0 + $0x28] sm:$0xff]  }
  0x19   :  { %886 = vmatpush3.bf16.msra.mxu0 %v992_v1  ;;  %917 = vmatprep.subr.bf16.mxu1 %v1008_v8  ;;  %v1005_v17 = vld [vmem:[%s1210_s0 + $0x30] sm:$0xff]   ;;  %v1006_v18 = vld [vmem:[%s1210_s0 + $0x38] sm:$0xff]   ;;  %v1011_v20 = vld [vmem:[#allocation2] sm:$0xff]  }
  0x1a   :  { %887 = vmatprep.subr.bf16.mxu0 %v993_v2  ;;  %v1010_v19 = vld [vmem:[%s1212_s2 + $0x18] sm:$0xff]   ;;  %v1012_v21 = vld [vmem:[#allocation2 + $0x8] sm:$0xff]   ;;  %v1013_v22 = vld [vmem:[#allocation2 + $0x10] sm:$0xff]  }
  0x1b   :  { %v1014_v23 = vld [vmem:[#allocation2 + $0x18] sm:$0xff]   ;;  %v1015_v24 = vld [vmem:[#allocation2 + $0x20] sm:$0xff]   ;;  %v1016_v25 = vld [vmem:[#allocation2 + $0x28] sm:$0xff]  }
  0x1c   :  { %918 = vmatpush3.bf16.msra.mxu1 %v1008_v8  ;;  %v1017_v50 = vld [vmem:[#allocation2 + $0x30] sm:$0xff]   ;;  %v1018_v51 = vld [vmem:[#allocation2 + $0x38] sm:$0xff]   ;;  %v738_v52 = vld [vmem:[%s1213_s3] ss:$0 sm:$0xff] }
  0x1d   :  { %888 = vmatpush3.bf16.msra.mxu0 %v993_v2  ;;  %919 = vmatprep.subr.bf16.mxu1 %v1009_v10 }
  0x1e   :  { %889 = vmatprep.subr.bf16.mxu0 %v994_v3 }
  0x20   :  { %920 = vmatpush3.bf16.msra.mxu1 %v1009_v10 }
  0x21   :  { %890 = vmatpush3.bf16.msra.mxu0 %v994_v3  ;;  %921 = vmatprep.subr.bf16.mxu1 %v1010_v19 }
  0x22   :  { %891 = vmatprep.subr.bf16.mxu0 %v995_v5 }
  0x24   :  { %922 = vmatpush3.bf16.msra.mxu1 %v1010_v19 }
  0x25   :  { %892 = vmatpush3.bf16.msra.mxu0 %v995_v5  ;;  %971 = vmatprep.subr.bf16.mxu1 %v1011_v20 }
  0x26   :  { %893 = vmatprep.subr.bf16.mxu0 %v996_v6 }
  0x29   :  { %894 = vmatpush3.bf16.msra.mxu0 %v996_v6 }
  0x2a   :  { %895 = vmatprep.subr.bf16.mxu0 %v997_v9 }
  0x2d   :  { %896 = vmatpush3.bf16.msra.mxu0 %v997_v9 }
  0x2e   :  { %897 = vmatprep.subr.bf16.mxu0 %v998_v11 }
  0x31   :  { %898 = vmatpush3.bf16.msra.mxu0 %v998_v11 }
  0x32   :  { %939 = vmatprep.subr.bf16.mxu0 %v1011_v20 }
  0x34   :  { %900 = vmatmul.mubr.bf16.vlgmr.msra.gmra.mrb[0].mxu0 %v1000_v12 }
  0x35   :  { %903 = vmatprep.mubr.bf16.mxu0 %v1001_v13  ;;  %940 = vmatpush3.bf16.msra.mxu0 %v1011_v20 }
  0x36   :  { %941 = vmatprep.subr.bf16.mxu0 %v1012_v21 }
  0x39   :  { %942 = vmatpush3.bf16.msra.mxu0 %v1012_v21 }
  0x3a   :  { %943 = vmatprep.subr.bf16.mxu0 %v1013_v22 }
  0x3c   :  { %904 = vmatmul.mubr.bf16.gmra.mrb[4].mxu0 %v1002_v14 }
  0x3d   :  { %907 = vmatprep.mubr.bf16.mxu0 %v1003_v15  ;;  %944 = vmatpush3.bf16.msra.mxu0 %v1013_v22 }
  0x3e   :  { %945 = vmatprep.subr.bf16.mxu0 %v1014_v23 }
  0x41   :  { %946 = vmatpush3.bf16.msra.mxu0 %v1014_v23 }
  0x42   :  { %947 = vmatprep.subr.bf16.mxu0 %v1015_v24 }
  0x44   :  { %908 = vmatmul.mubr.bf16.gmra.mrb[8].mxu0 %v1004_v16 }
  0x45   :  { %911 = vmatprep.mubr.bf16.mxu0 %v1005_v17  ;;  %948 = vmatpush3.bf16.msra.mxu0 %v1015_v24 }
  0x46   :  { %949 = vmatprep.subr.bf16.mxu0 %v1016_v25 }
  0x49   :  { %950 = vmatpush3.bf16.msra.mxu0 %v1016_v25 }
  0x4a   :  { %951 = vmatprep.subr.bf16.mxu0 %v1017_v50 }
  0x4c   :  { %912 = vmatmul.mubr.bf16.gmra.mrb[12].mxu0 %v1006_v18 }
  0x4d   :  { %952 = vmatpush3.bf16.msra.mxu0 %v1017_v50 }
  0x4e   :  { %953 = vmatprep.subr.bf16.mxu0 %v1018_v51 }
  0x51   :  { %954 = vmatpush3.bf16.msra.mxu0 %v1018_v51 }
 0x107   :  { %v901_v26 = vpop.f32.mrb[0].mxu0 }
 0x108   :  { %v201_v27 = vpop.f32.mrb[1].mxu0 }
 0x109   :  { %v902_v28 = vpop.f32.mrb[2].mxu0 }
 0x10a   :  { %v265_v29 = vpack.c.bf16 %v902_v28, %v901_v26  ;;  %v204_v30 = vpop.f32.mrb[3].mxu0 }
 0x10b   :  { %v264_v31 = vpack.c.bf16 %v204_v30, %v201_v27 }
 0x10d   :  { %923 = vmatprep.mubr.msk.bf16.mxu1 %vm311_vm0, %v264_v31 }
 0x10e   :  { %924 = vmatmul.mubr.msk.bf16.vlgmr.msra.gmra.mrb[0].mxu1 %vm311_vm0, %v265_v29 }
 0x10f   :  { %v905_v32 = vpop.f32.mrb[4].mxu0  ;;  %979 = vmatpush3.bf16.msra.mxu1 %v1011_v20 }
 0x110   :  { %v217_v33 = vpop.f32.mrb[5].mxu0  ;;  %972 = vmatprep.subr.bf16.mxu1 %v1012_v21 }
 0x111   :  { %v906_v34 = vpop.f32.mrb[6].mxu0 }
 0x112   :  { %v267_v35 = vpack.c.bf16 %v906_v34, %v905_v32  ;;  %v220_v36 = vpop.f32.mrb[7].mxu0 }
 0x113   :  { %v266_v37 = vpack.c.bf16 %v220_v36, %v217_v33  ;;  %980 = vmatpush3.bf16.msra.mxu1 %v1012_v21 }
 0x114   :  { %973 = vmatprep.subr.bf16.mxu1 %v1013_v22 }
 0x115   :  { %927 = vmatprep.mubr.msk.bf16.mxu1 %vm311_vm0, %v266_v37 }
 0x116   :  { %928 = vmatmul.mubr.msk.bf16.gmra.mrb[4].mxu1 %vm311_vm0, %v267_v35 }
 0x117   :  { %v909_v38 = vpop.f32.mrb[8].mxu0  ;;  %981 = vmatpush3.bf16.msra.mxu1 %v1013_v22 }
 0x118   :  { %v233_v39 = vpop.f32.mrb[9].mxu0  ;;  %974 = vmatprep.subr.bf16.mxu1 %v1014_v23 }
 0x119   :  { %v910_v40 = vpop.f32.mrb[10].mxu0 }
 0x11a   :  { %v269_v41 = vpack.c.bf16 %v910_v40, %v909_v38  ;;  %v236_v42 = vpop.f32.mrb[11].mxu0 }
 0x11b   :  { %v268_v43 = vpack.c.bf16 %v236_v42, %v233_v39  ;;  %982 = vmatpush3.bf16.msra.mxu1 %v1014_v23 }
 0x11c   :  { %975 = vmatprep.subr.bf16.mxu1 %v1015_v24 }
 0x11d   :  { %931 = vmatprep.mubr.msk.bf16.mxu1 %vm311_vm0, %v268_v43 }
 0x11e   :  { %932 = vmatmul.mubr.msk.bf16.gmra.mrb[8].mxu1 %vm311_vm0, %v269_v41 }
 0x11f   :  { %v913_v44 = vpop.f32.mrb[12].mxu0  ;;  %983 = vmatpush3.bf16.msra.mxu1 %v1015_v24 }
 0x120   :  { %v249_v45 = vpop.f32.mrb[13].mxu0  ;;  %976 = vmatprep.subr.bf16.mxu1 %v1016_v25 }
 0x121   :  { %v914_v46 = vpop.f32.mrb[14].mxu0 }
 0x122   :  { %v271_v47 = vpack.c.bf16 %v914_v46, %v913_v44  ;;  %v252_v48 = vpop.f32.mrb[15].mxu0  ;;  %v751_v46 = vld [vmem:[%s1215_s5] ss:$0 sm:$0xff]  ;;  %s1070_s5 = smov [#allocation5]  }
 0x123   :  { %v270_v49 = vpack.c.bf16 %v252_v48, %v249_v45  ;;  %984 = vmatpush3.bf16.msra.mxu1 %v1016_v25  ;;  %s710_s27 = sshll.u32 %s1070_s5, 4  ;;  %s711_s27 = int_to_ptr.vmem [resolvable:$true] %s710_s27 }
 0x124   :  { %977 = vmatprep.subr.bf16.mxu1 %v1017_v50  ;;  %s1041_s28 = scalar_lea.vmem %s711_s27, 1024  ;;  %p1046_p9 = scmp.lt.s32.totalorder %s711_s27, %s711_s27 }
 0x125   :  { %935 = vmatprep.mubr.msk.bf16.mxu1 %vm311_vm0, %v270_v49  ;;  %p1042_p8 = scmp.ne.s32.totalorder %s711_s27, %s1041_s28  ;;  %p1047_p10 = scmp.lt.s32.totalorder %s1041_s28, %s1041_s28 }
 0x126   :  { %936 = vmatmul.mubr.msk.bf16.gmra.mrb[12].mxu1 %vm311_vm0, %v271_v47 }
 0x127   :  { %985 = vmatpush3.bf16.msra.mxu1 %v1017_v50  ;;  %p1048_p11 = por %p1047_p10, %p1046_p9 }
 0x128   :  { %978 = vmatprep.subr.bf16.mxu1 %v1018_v51 }
 0x129   :  { %p1049_p12 = pnand %p1048_p11, %p1042_p8 }
 0x12b   :  { %986 = vmatpush3.bf16.msra.mxu1 %v1018_v51 }
 0x1e1   :  { %v925_v53 = vpop.f32.mrb[0].mxu1 }
 0x1e2   :  { %v379_v54 = vadd.f32 %v925_v53, %v738_v52  ;;  %v370_v55 = vpop.f32.mrb[1].mxu1 }
 0x1e3   :  { %v371_v56 = vadd.f32 %v738_v52, %v370_v55  ;;  %v926_v57 = vpop.f32.mrb[2].mxu1 }
 0x1e4   :  { %v382_v58 = vadd.f32 %v926_v57, %v738_v52  ;;  %v373_v59 = vpop.f32.mrb[3].mxu1  ;;  %v435_v61 = vmax.f32 %v379_v54, 0.0 }
 0x1e5   :  { %v374_v60 = vadd.f32 %v738_v52, %v373_v59  ;;  %v433_v63 = vmax.f32 %v371_v56, 0.0 }
 0x1e6   :  { %v436_v62 = vmax.f32 %v382_v58, 0.0 }
 0x1e7   :  { %v434_v0 = vmax.f32 %v374_v60, 0.0 }
 0x1e8   :  { %v450_v1 = vpack.c.bf16 %v436_v62, %v435_v61 }
 0x1e9   :  { %v449_v2 = vpack.c.bf16 %v434_v0, %v433_v63  ;;  %v929_v3 = vpop.f32.mrb[4].mxu1 }
 0x1ea   :  { %v395_v4 = vadd.f32 %v929_v3, %v738_v52  ;;  %v386_v5 = vpop.f32.mrb[5].mxu1 }
 0x1eb   :  { %v387_v6 = vadd.f32 %v738_v52, %v386_v5  ;;  %v930_v7 = vpop.f32.mrb[6].mxu1  ;;  %955 = vmatprep.mubr.bf16.mxu0 %v449_v2 }
 0x1ec   :  { %v398_v8 = vadd.f32 %v930_v7, %v738_v52  ;;  %v389_v9 = vpop.f32.mrb[7].mxu1  ;;  %956 = vmatmul.mubr.bf16.vlgmr.msra.gmra.mrb[16].mxu0 %v450_v1  ;;  %v439_v11 = vmax.f32 %v395_v4, 0.0 }
 0x1ed   :  { %v390_v10 = vadd.f32 %v738_v52, %v389_v9  ;;  %v437_v13 = vmax.f32 %v387_v6, 0.0 }
 0x1ee   :  { %v440_v12 = vmax.f32 %v398_v8, 0.0 }
 0x1ef   :  { %v438_v14 = vmax.f32 %v390_v10, 0.0 }
 0x1f0   :  { %v452_v15 = vpack.c.bf16 %v440_v12, %v439_v11 }
 0x1f1   :  { %v451_v16 = vpack.c.bf16 %v438_v14, %v437_v13  ;;  %v933_v17 = vpop.f32.mrb[8].mxu1 }
 0x1f2   :  { %v411_v18 = vadd.f32 %v933_v17, %v738_v52  ;;  %v402_v19 = vpop.f32.mrb[9].mxu1 }
 0x1f3   :  { %v403_v20 = vadd.f32 %v738_v52, %v402_v19  ;;  %v934_v21 = vpop.f32.mrb[10].mxu1  ;;  %959 = vmatprep.mubr.bf16.mxu1 %v451_v16 }
 0x1f4   :  { %v414_v22 = vadd.f32 %v934_v21, %v738_v52  ;;  %v405_v23 = vpop.f32.mrb[11].mxu1  ;;  %960 = vmatmul.mubr.bf16.vlgmr.msra.gmra.mrb[16].mxu1 %v452_v15  ;;  %v443_v25 = vmax.f32 %v411_v18, 0.0 }
 0x1f5   :  { %v406_v24 = vadd.f32 %v738_v52, %v405_v23  ;;  %v441_v27 = vmax.f32 %v403_v20, 0.0 }
 0x1f6   :  { %v444_v26 = vmax.f32 %v414_v22, 0.0 }
 0x1f7   :  { %v442_v28 = vmax.f32 %v406_v24, 0.0 }
 0x1f8   :  { %v454_v29 = vpack.c.bf16 %v444_v26, %v443_v25 }
 0x1f9   :  { %v453_v30 = vpack.c.bf16 %v442_v28, %v441_v27  ;;  %v937_v31 = vpop.f32.mrb[12].mxu1 }
 0x1fa   :  { %v427_v32 = vadd.f32 %v937_v31, %v738_v52  ;;  %v418_v33 = vpop.f32.mrb[13].mxu1 }
 0x1fb   :  { %v419_v34 = vadd.f32 %v738_v52, %v418_v33  ;;  %v938_v35 = vpop.f32.mrb[14].mxu1  ;;  %963 = vmatprep.mubr.bf16.mxu1 %v453_v30 }
 0x1fc   :  { %v430_v36 = vadd.f32 %v938_v35, %v738_v52  ;;  %v421_v37 = vpop.f32.mrb[15].mxu1  ;;  %964 = vmatmul.mubr.bf16.gmra.mrb[20].mxu1 %v454_v29  ;;  %v447_v39 = vmax.f32 %v427_v32, 0.0 }
 0x1fd   :  { %v422_v38 = vadd.f32 %v738_v52, %v421_v37  ;;  %v445_v41 = vmax.f32 %v419_v34, 0.0 }
 0x1fe   :  { %v448_v40 = vmax.f32 %v430_v36, 0.0 }
 0x1ff   :  { %v446_v42 = vmax.f32 %v422_v38, 0.0 }
 0x200   :  { %v456_v43 = vpack.c.bf16 %v448_v40, %v447_v39 }
 0x201   :  { %v455_v44 = vpack.c.bf16 %v446_v42, %v445_v41 }
 0x203   :  { %967 = vmatprep.mubr.bf16.mxu1 %v455_v44 }
 0x204   :  { %968 = vmatmul.mubr.bf16.gmra.mrb[24].mxu1 %v456_v43 }
 0x2bf   :  { %v957_v45 = vpop.f32.mrb[16].mxu0 }
 0x2c0   :  { %v562_v47 = vpop.f32.mrb[17].mxu0  ;;  %v571_v49 = vadd.f32 %v957_v45, %v751_v46 }
 0x2c1   :  { %v958_v48 = vpop.f32.mrb[18].mxu0  ;;  %v563_v53 = vadd.f32 %v751_v46, %v562_v47 }
 0x2c2   :  { %v574_v50 = vadd.f32 %v958_v48, %v751_v46  ;;  %v565_v51 = vpop.f32.mrb[19].mxu0 }
 0x2c3   :  { %v566_v52 = vadd.f32 %v751_v46, %v565_v51 }
 0x2c4   :  { %v800_v54 = vpack.c.bf16 %v574_v50, %v571_v49 }
 0x2c5   :  { %v795_v55 = vpack.c.bf16 %v566_v52, %v563_v53 }
 0x2c6   :  { %832 = vst [vmem:[#allocation5 + $0x8] sm:$0xff] %v800_v54  }
 0x2c7   :  { %796 = vst [vmem:[#allocation5] sm:$0xff] %v795_v55   ;;  %v961_v56 = vpop.f32.mrb[16].mxu1 }
 0x2c8   :  { %v578_v57 = vpop.f32.mrb[17].mxu1  ;;  %v587_v59 = vadd.f32 %v961_v56, %v751_v46 }
 0x2c9   :  { %v962_v58 = vpop.f32.mrb[18].mxu1  ;;  %v579_v62 = vadd.f32 %v751_v46, %v578_v57 }
 0x2ca   :  { %v590_v60 = vadd.f32 %v962_v58, %v751_v46  ;;  %v581_v61 = vpop.f32.mrb[19].mxu1 }
 0x2cb   :  { %v582_v63 = vadd.f32 %v751_v46, %v581_v61 }
 0x2cc   :  { %v810_v0 = vpack.c.bf16 %v590_v60, %v587_v59 }
 0x2cd   :  { %v805_v1 = vpack.c.bf16 %v582_v63, %v579_v62 }
 0x2ce   :  { %834 = vst [vmem:[#allocation5 + $0x18] sm:$0xff] %v810_v0  }
 0x2cf   :  { %833 = vst [vmem:[#allocation5 + $0x10] sm:$0xff] %v805_v1   ;;  %v965_v2 = vpop.f32.mrb[20].mxu1 }
 0x2d0   :  { %v594_v3 = vpop.f32.mrb[21].mxu1  ;;  %v603_v5 = vadd.f32 %v965_v2, %v751_v46 }
 0x2d1   :  { %v966_v4 = vpop.f32.mrb[22].mxu1  ;;  %v595_v8 = vadd.f32 %v751_v46, %v594_v3 }
 0x2d2   :  { %v606_v6 = vadd.f32 %v966_v4, %v751_v46  ;;  %v597_v7 = vpop.f32.mrb[23].mxu1 }
 0x2d3   :  { %v598_v9 = vadd.f32 %v751_v46, %v597_v7 }
 0x2d4   :  { %v820_v10 = vpack.c.bf16 %v606_v6, %v603_v5 }
 0x2d5   :  { %v815_v11 = vpack.c.bf16 %v598_v9, %v595_v8 }
 0x2d6   :  { %836 = vst [vmem:[#allocation5 + $0x28] sm:$0xff] %v820_v10  }
 0x2d7   :  { %835 = vst [vmem:[#allocation5 + $0x20] sm:$0xff] %v815_v11   ;;  %v969_v12 = vpop.f32.mrb[24].mxu1 }
 0x2d8   :  { %v610_v13 = vpop.f32.mrb[25].mxu1  ;;  %v619_v15 = vadd.f32 %v969_v12, %v751_v46 }
 0x2d9   :  { %v970_v14 = vpop.f32.mrb[26].mxu1  ;;  %v611_v18 = vadd.f32 %v751_v46, %v610_v13 }
 0x2da   :  { %v622_v16 = vadd.f32 %v970_v14, %v751_v46  ;;  %v613_v17 = vpop.f32.mrb[27].mxu1 }
 0x2db   :  { %v614_v19 = vadd.f32 %v751_v46, %v613_v17 }
 0x2dc   :  { %v830_v20 = vpack.c.bf16 %v622_v16, %v619_v15 }
 0x2dd   :  { %v825_v21 = vpack.c.bf16 %v614_v19, %v611_v18 }
 0x2de   :  { %838 = vst [vmem:[#allocation5 + $0x38] sm:$0xff] %v830_v20  }
 0x2df   :  { %837 = vst [vmem:[#allocation5 + $0x30] sm:$0xff] %v825_v21  }
 0x2e0   :  { %1052 = shalt.err (!%p1049_p12)
}
 0x2e1   :  { %s1053_s9 = scalar_lea.hbm %s1216_s6, 1024 }
 0x2e2   :  { %p1054_p13 = scmp.ne.s32.totalorder %s1216_s6, %s1053_s9  ;;  %p1057_p0 = scmp.lt.u32.totalorder %s1053_s9, %s1216_s6 }
 0x2e4   :  { %p1059_p1 = pnand %p1057_p0, %p1054_p13 }
 0x2e6   :  { %1062 = shalt.err (!%p1059_p1)
}
 0x2e7   :  { %716 = dma.vmem_to_hbm [thread:$0]  %s711_s27, 1024, %s1216_s6, [#allocation4], %s1068_s7, %s1068_s7, %s1069_s8  }
 0x2e8   :  { %1065 = dma.done.wait [#allocation4], 1024  }
 0x2e9   :  { %1066 = vsyncadd [#allocation4], 4294966272 }
 0x2ea   :  { %720 = vsyncpa [#allocation3], 1 }
 0x2eb   :  { %721 = vsyncpa [#allocation4], 1 }

// kernel: tpu_custom_call.1
= control target key start
LH: loop header
LB: loop body
LE: loop exit
PB: predicated region body
PF: predicated region fallthrough
CT: control target
= control target key end

     0   :  { %11 = vsyncpa [#allocation3], 0  ;;  %s1210_s0 = inlined_call_operand.vmem [shape: bf16[128,128], index: 0, kind: input, shape index: {}]   ;;  %s1211_s1 = inlined_call_operand.vmem [shape: bf16[128,64], index: 1, kind: input, shape index: {}]   ;;  %s1212_s2 = inlined_call_operand.vmem [shape: bf16[64,128], index: 2, kind: input, shape index: {}]   ;;  %s1213_s3 = inlined_call_operand.vmem [shape: f32[1,128], index: 3, kind: input, shape index: {}]   ;;  %s1214_s4 = inlined_call_operand.hbm [shape: bf16[128,128], index: 4, kind: input, shape index: {}]   ;;  %s1215_s5 = inlined_call_operand.vmem [shape: f32[1,128], index: 5, kind: input, shape index: {}]   ;;  %s1216_s6 = inlined_call_operand.hbm [shape: bf16[128,128], index: 6, kind: output, shape index: {}]  }
   0x1   :  { %12 = vsyncpa [#allocation4], 0  ;;  %s1067_s21 = smov [#allocation2]   ;;  %s1019_s25 = scalar_lea.hbm %s1214_s4, 1024 }
   0x2   :  { %s26_s22 = sshll.u32 %s1067_s21, 4  ;;  %p1020_p0 = scmp.ne.s32.totalorder %s1214_s4, %s1019_s25  ;;  %s27_s22 = int_to_ptr.vmem [resolvable:$true] %s26_s22 }
   0x3   :  { %p1023_p1 = scmp.lt.u32.totalorder %s1019_s25, %s1214_s4 }
   0x5   :  { %p1025_p2 = pnand %p1023_p1, %p1020_p0 }
   0x7   :  { %1028 = shalt.err (!%p1025_p2)
}
   0x8   :  { %s1029_s30 = scalar_lea.vmem %s27_s22, 1024  ;;  %p1034_p4 = scmp.lt.s32.totalorder %s27_s22, %s27_s22 }
   0x9   :  { %p1030_p3 = scmp.ne.s32.totalorder %s27_s22, %s1029_s30  ;;  %p1035_p5 = scmp.lt.s32.totalorder %s1029_s30, %s1029_s30 }
   0xb   :  { %p1036_p6 = por %p1035_p5, %p1034_p4 }
   0xd   :  { %p1037_p7 = pnand %p1036_p6, %p1030_p3 }
   0xf   :  { %1040 = shalt.err (!%p1037_p7)
}
  0x10   :  { %s1068_s7 = smov 64   ;;  %s1069_s8 = smov 4  }
  0x11   :  { %32 = dma.hbm_to_vmem [thread:$0]  %s1214_s4, 1024, %s27_s22, [#allocation3], %s1068_s7, %s1068_s7, %s1069_s8  }
  0x12   :  { %1063 = dma.done.wait [#allocation3], 1024  }
  0x13   :  { %1064 = vsyncadd [#allocation3], 4294966272  ;;  %v991_v0 = vld [vmem:[%s1211_s1] sm:$0xff]   ;;  %v992_v1 = vld [vmem:[%s1211_s1 + $0x8] sm:$0xff]   ;;  %vm311_vm0 = vcmask 523264  }
  0x14   :  { %883 = vmatprep.subr.bf16.mxu0 %v991_v0  ;;  %v993_v2 = vld [vmem:[%s1211_s1 + $0x10] sm:$0xff]   ;;  %v994_v3 = vld [vmem:[%s1211_s1 + $0x18] sm:$0xff]   ;;  %v999_v4 = vld [vmem:[%s1210_s0] sm:$0xff]  }
  0x15   :  { %884 = vmatpush3.bf16.msra.mxu0 %v991_v0  ;;  %899 = vmatprep.mubr.bf16.mxu0 %v999_v4  ;;  %v995_v5 = vld [vmem:[%s1211_s1 + $0x20] sm:$0xff]   ;;  %v996_v6 = vld [vmem:[%s1211_s1 + $0x28] sm:$0xff]   ;;  %v997_v9 = vld [vmem:[%s1211_s1 + $0x30] sm:$0xff]  }
  0x16   :  { %885 = vmatprep.subr.bf16.mxu0 %v992_v1  ;;  %v1007_v7 = vld [vmem:[%s1212_s2] sm:$0xff]   ;;  %v1008_v8 = vld [vmem:[%s1212_s2 + $0x8] sm:$0xff]   ;;  %v1009_v10 = vld [vmem:[%s1212_s2 + $0x10] sm:$0xff]  }
  0x17   :  { %915 = vmatprep.subr.bf16.mxu1 %v1007_v7  ;;  %v998_v11 = vld [vmem:[%s1211_s1 + $0x38] sm:$0xff]   ;;  %v1000_v12 = vld [vmem:[%s1210_s0 + $0x8] sm:$0xff]   ;;  %v1001_v13 = vld [vmem:[%s1210_s0 + $0x10] sm:$0xff]  }
  0x18   :  { %916 = vmatpush3.bf16.msra.mxu1 %v1007_v7  ;;  %v1002_v14 = vld [vmem:[%s1210_s0 + $0x18] sm:$0xff]   ;;  %v1003_v15 = vld [vmem:[%s1210_s0 + $0x20] sm:$0xff]   ;;  %v1004_v16 = vld [vmem:[%s1210_s0 + $0x28] sm:$0xff]  }
  0x19   :  { %886 = vmatpush3.bf16.msra.mxu0 %v992_v1  ;;  %917 = vmatprep.subr.bf16.mxu1 %v1008_v8  ;;  %v1005_v17 = vld [vmem:[%s1210_s0 + $0x30] sm:$0xff]   ;;  %v1006_v18 = vld [vmem:[%s1210_s0 + $0x38] sm:$0xff]   ;;  %v1011_v20 = vld [vmem:[#allocation2] sm:$0xff]  }
  0x1a   :  { %887 = vmatprep.subr.bf16.mxu0 %v993_v2  ;;  %v1010_v19 = vld [vmem:[%s1212_s2 + $0x18] sm:$0xff]   ;;  %v1012_v21 = vld [vmem:[#allocation2 + $0x8] sm:$0xff]   ;;  %v1013_v22 = vld [vmem:[#allocation2 + $0x10] sm:$0xff]  }
  0x1b   :  { %v1014_v23 = vld [vmem:[#allocation2 + $0x18] sm:$0xff]   ;;  %v1015_v24 = vld [vmem:[#allocation2 + $0x20] sm:$0xff]   ;;  %v1016_v25 = vld [vmem:[#allocation2 + $0x28] sm:$0xff]  }
  0x1c   :  { %918 = vmatpush3.bf16.msra.mxu1 %v1008_v8  ;;  %v1017_v50 = vld [vmem:[#allocation2 + $0x30] sm:$0xff]   ;;  %v1018_v51 = vld [vmem:[#allocation2 + $0x38] sm:$0xff]   ;;  %v738_v52 = vld [vmem:[%s1213_s3] ss:$0 sm:$0xff] }
  0x1d   :  { %888 = vmatpush3.bf16.msra.mxu0 %v993_v2  ;;  %919 = vmatprep.subr.bf16.mxu1 %v1009_v10 }
  0x1e   :  { %889 = vmatprep.subr.bf16.mxu0 %v994_v3 }
  0x20   :  { %920 = vmatpush3.bf16.msra.mxu1 %v1009_v10 }
  0x21   :  { %890 = vmatpush3.bf16.msra.mxu0 %v994_v3  ;;  %921 = vmatprep.subr.bf16.mxu1 %v1010_v19 }
  0x22   :  { %891 = vmatprep.subr.bf16.mxu0 %v995_v5 }
  0x24   :  { %922 = vmatpush3.bf16.msra.mxu1 %v1010_v19 }
  0x25   :  { %892 = vmatpush3.bf16.msra.mxu0 %v995_v5  ;;  %971 = vmatprep.subr.bf16.mxu1 %v1011_v20 }
  0x26   :  { %893 = vmatprep.subr.bf16.mxu0 %v996_v6 }
  0x29   :  { %894 = vmatpush3.bf16.msra.mxu0 %v996_v6 }
  0x2a   :  { %895 = vmatprep.subr.bf16.mxu0 %v997_v9 }
  0x2d   :  { %896 = vmatpush3.bf16.msra.mxu0 %v997_v9 }
  0x2e   :  { %897 = vmatprep.subr.bf16.mxu0 %v998_v11 }
  0x31   :  { %898 = vmatpush3.bf16.msra.mxu0 %v998_v11 }
  0x32   :  { %939 = vmatprep.subr.bf16.mxu0 %v1011_v20 }
  0x34   :  { %900 = vmatmul.mubr.bf16.vlgmr.msra.gmra.mrb[0].mxu0 %v1000_v12 }
  0x35   :  { %903 = vmatprep.mubr.bf16.mxu0 %v1001_v13  ;;  %940 = vmatpush3.bf16.msra.mxu0 %v1011_v20 }
  0x36   :  { %941 = vmatprep.subr.bf16.mxu0 %v1012_v21 }
  0x39   :  { %942 = vmatpush3.bf16.msra.mxu0 %v1012_v21 }
  0x3a   :  { %943 = vmatprep.subr.bf16.mxu0 %v1013_v22 }
  0x3c   :  { %904 = vmatmul.mubr.bf16.gmra.mrb[4].mxu0 %v1002_v14 }
  0x3d   :  { %907 = vmatprep.mubr.bf16.mxu0 %v1003_v15  ;;  %944 = vmatpush3.bf16.msra.mxu0 %v1013_v22 }
  0x3e   :  { %945 = vmatprep.subr.bf16.mxu0 %v1014_v23 }
  0x41   :  { %946 = vmatpush3.bf16.msra.mxu0 %v1014_v23 }
  0x42   :  { %947 = vmatprep.subr.bf16.mxu0 %v1015_v24 }
  0x44   :  { %908 = vmatmul.mubr.bf16.gmra.mrb[8].mxu0 %v1004_v16 }
  0x45   :  { %911 = vmatprep.mubr.bf16.mxu0 %v1005_v17  ;;  %948 = vmatpush3.bf16.msra.mxu0 %v1015_v24 }
  0x46   :  { %949 = vmatprep.subr.bf16.mxu0 %v1016_v25 }
  0x49   :  { %950 = vmatpush3.bf16.msra.mxu0 %v1016_v25 }
  0x4a   :  { %951 = vmatprep.subr.bf16.mxu0 %v1017_v50 }
  0x4c   :  { %912 = vmatmul.mubr.bf16.gmra.mrb[12].mxu0 %v1006_v18 }
  0x4d   :  { %952 = vmatpush3.bf16.msra.mxu0 %v1017_v50 }
  0x4e   :  { %953 = vmatprep.subr.bf16.mxu0 %v1018_v51 }
  0x51   :  { %954 = vmatpush3.bf16.msra.mxu0 %v1018_v51 }
 0x107   :  { %v901_v26 = vpop.f32.mrb[0].mxu0 }
 0x108   :  { %v201_v27 = vpop.f32.mrb[1].mxu0 }
 0x109   :  { %v902_v28 = vpop.f32.mrb[2].mxu0 }
 0x10a   :  { %v265_v29 = vpack.c.bf16 %v902_v28, %v901_v26  ;;  %v204_v30 = vpop.f32.mrb[3].mxu0 }
 0x10b   :  { %v264_v31 = vpack.c.bf16 %v204_v30, %v201_v27 }
 0x10d   :  { %923 = vmatprep.mubr.msk.bf16.mxu1 %vm311_vm0, %v264_v31 }
 0x10e   :  { %924 = vmatmul.mubr.msk.bf16.vlgmr.msra.gmra.mrb[0].mxu1 %vm311_vm0, %v265_v29 }
 0x10f   :  { %v905_v32 = vpop.f32.mrb[4].mxu0  ;;  %979 = vmatpush3.bf16.msra.mxu1 %v1011_v20 }
 0x110   :  { %v217_v33 = vpop.f32.mrb[5].mxu0  ;;  %972 = vmatprep.subr.bf16.mxu1 %v1012_v21 }
 0x111   :  { %v906_v34 = vpop.f32.mrb[6].mxu0 }
 0x112   :  { %v267_v35 = vpack.c.bf16 %v906_v34, %v905_v32  ;;  %v220_v36 = vpop.f32.mrb[7].mxu0 }
 0x113   :  { %v266_v37 = vpack.c.bf16 %v220_v36, %v217_v33  ;;  %980 = vmatpush3.bf16.msra.mxu1 %v1012_v21 }
 0x114   :  { %973 = vmatprep.subr.bf16.mxu1 %v1013_v22 }
 0x115   :  { %927 = vmatprep.mubr.msk.bf16.mxu1 %vm311_vm0, %v266_v37 }
 0x116   :  { %928 = vmatmul.mubr.msk.bf16.gmra.mrb[4].mxu1 %vm311_vm0, %v267_v35 }
 0x117   :  { %v909_v38 = vpop.f32.mrb[8].mxu0  ;;  %981 = vmatpush3.bf16.msra.mxu1 %v1013_v22 }
 0x118   :  { %v233_v39 = vpop.f32.mrb[9].mxu0  ;;  %974 = vmatprep.subr.bf16.mxu1 %v1014_v23 }
 0x119   :  { %v910_v40 = vpop.f32.mrb[10].mxu0 }
 0x11a   :  { %v269_v41 = vpack.c.bf16 %v910_v40, %v909_v38  ;;  %v236_v42 = vpop.f32.mrb[11].mxu0 }
 0x11b   :  { %v268_v43 = vpack.c.bf16 %v236_v42, %v233_v39  ;;  %982 = vmatpush3.bf16.msra.mxu1 %v1014_v23 }
 0x11c   :  { %975 = vmatprep.subr.bf16.mxu1 %v1015_v24 }
 0x11d   :  { %931 = vmatprep.mubr.msk.bf16.mxu1 %vm311_vm0, %v268_v43 }
 0x11e   :  { %932 = vmatmul.mubr.msk.bf16.gmra.mrb[8].mxu1 %vm311_vm0, %v269_v41 }
 0x11f   :  { %v913_v44 = vpop.f32.mrb[12].mxu0  ;;  %983 = vmatpush3.bf16.msra.mxu1 %v1015_v24 }
 0x120   :  { %v249_v45 = vpop.f32.mrb[13].mxu0  ;;  %976 = vmatprep.subr.bf16.mxu1 %v1016_v25 }
 0x121   :  { %v914_v46 = vpop.f32.mrb[14].mxu0 }
 0x122   :  { %v271_v47 = vpack.c.bf16 %v914_v46, %v913_v44  ;;  %v252_v48 = vpop.f32.mrb[15].mxu0  ;;  %v751_v46 = vld [vmem:[%s1215_s5] ss:$0 sm:$0xff]  ;;  %s1070_s5 = smov [#allocation5]  }
 0x123   :  { %v270_v49 = vpack.c.bf16 %v252_v48, %v249_v45  ;;  %984 = vmatpush3.bf16.msra.mxu1 %v1016_v25  ;;  %s710_s27 = sshll.u32 %s1070_s5, 4  ;;  %s711_s27 = int_to_ptr.vmem [resolvable:$true] %s710_s27 }
 0x124   :  { %977 = vmatprep.subr.bf16.mxu1 %v1017_v50  ;;  %s1041_s28 = scalar_lea.vmem %s711_s27, 1024  ;;  %p1046_p9 = scmp.lt.s32.totalorder %s711_s27, %s711_s27 }
 0x125   :  { %935 = vmatprep.mubr.msk.bf16.mxu1 %vm311_vm0, %v270_v49  ;;  %p1042_p8 = scmp.ne.s32.totalorder %s711_s27, %s1041_s28  ;;  %p1047_p10 = scmp.lt.s32.totalorder %s1041_s28, %s1041_s28 }
 0x126   :  { %936 = vmatmul.mubr.msk.bf16.gmra.mrb[12].mxu1 %vm311_vm0, %v271_v47 }
 0x127   :  { %985 = vmatpush3.bf16.msra.mxu1 %v1017_v50  ;;  %p1048_p11 = por %p1047_p10, %p1046_p9 }
 0x128   :  { %978 = vmatprep.subr.bf16.mxu1 %v1018_v51 }
 0x129   :  { %p1049_p12 = pnand %p1048_p11, %p1042_p8 }
 0x12b   :  { %986 = vmatpush3.bf16.msra.mxu1 %v1018_v51 }
 0x1e1   :  { %v925_v53 = vpop.f32.mrb[0].mxu1 }
 0x1e2   :  { %v379_v54 = vadd.f32 %v925_v53, %v738_v52  ;;  %v370_v55 = vpop.f32.mrb[1].mxu1 }
 0x1e3   :  { %v371_v56 = vadd.f32 %v738_v52, %v370_v55  ;;  %v926_v57 = vpop.f32.mrb[2].mxu1 }
 0x1e4   :  { %v382_v58 = vadd.f32 %v926_v57, %v738_v52  ;;  %v373_v59 = vpop.f32.mrb[3].mxu1  ;;  %v435_v61 = vmax.f32 %v379_v54, 0.0 }
 0x1e5   :  { %v374_v60 = vadd.f32 %v738_v52, %v373_v59  ;;  %v433_v63 = vmax.f32 %v371_v56, 0.0 }
 0x1e6   :  { %v436_v62 = vmax.f32 %v382_v58, 0.0 }
 0x1e7   :  { %v434_v0 = vmax.f32 %v374_v60, 0.0 }
 0x1e8   :  { %v450_v1 = vpack.c.bf16 %v436_v62, %v435_v61 }
 0x1e9   :  { %v449_v2 = vpack.c.bf16 %v434_v0, %v433_v63  ;;  %v929_v3 = vpop.f32.mrb[4].mxu1 }
 0x1ea   :  { %v395_v4 = vadd.f32 %v929_v3, %v738_v52  ;;  %v386_v5 = vpop.f32.mrb[5].mxu1 }
 0x1eb   :  { %v387_v6 = vadd.f32 %v738_v52, %v386_v5  ;;  %v930_v7 = vpop.f32.mrb[6].mxu1  ;;  %955 = vmatprep.mubr.bf16.mxu0 %v449_v2 }
 0x1ec   :  { %v398_v8 = vadd.f32 %v930_v7, %v738_v52  ;;  %v389_v9 = vpop.f32.mrb[7].mxu1  ;;  %956 = vmatmul.mubr.bf16.vlgmr.msra.gmra.mrb[16].mxu0 %v450_v1  ;;  %v439_v11 = vmax.f32 %v395_v4, 0.0 }
 0x1ed   :  { %v390_v10 = vadd.f32 %v738_v52, %v389_v9  ;;  %v437_v13 = vmax.f32 %v387_v6, 0.0 }
 0x1ee   :  { %v440_v12 = vmax.f32 %v398_v8, 0.0 }
 0x1ef   :  { %v438_v14 = vmax.f32 %v390_v10, 0.0 }
 0x1f0   :  { %v452_v15 = vpack.c.bf16 %v440_v12, %v439_v11 }
 0x1f1   :  { %v451_v16 = vpack.c.bf16 %v438_v14, %v437_v13  ;;  %v933_v17 = vpop.f32.mrb[8].mxu1 }
 0x1f2   :  { %v411_v18 = vadd.f32 %v933_v17, %v738_v52  ;;  %v402_v19 = vpop.f32.mrb[9].mxu1 }
 0x1f3   :  { %v403_v20 = vadd.f32 %v738_v52, %v402_v19  ;;  %v934_v21 = vpop.f32.mrb[10].mxu1  ;;  %959 = vmatprep.mubr.bf16.mxu1 %v451_v16 }
 0x1f4   :  { %v414_v22 = vadd.f32 %v934_v21, %v738_v52  ;;  %v405_v23 = vpop.f32.mrb[11].mxu1  ;;  %960 = vmatmul.mubr.bf16.vlgmr.msra.gmra.mrb[16].mxu1 %v452_v15  ;;  %v443_v25 = vmax.f32 %v411_v18, 0.0 }
 0x1f5   :  { %v406_v24 = vadd.f32 %v738_v52, %v405_v23  ;;  %v441_v27 = vmax.f32 %v403_v20, 0.0 }
 0x1f6   :  { %v444_v26 = vmax.f32 %v414_v22, 0.0 }
 0x1f7   :  { %v442_v28 = vmax.f32 %v406_v24, 0.0 }
 0x1f8   :  { %v454_v29 = vpack.c.bf16 %v444_v26, %v443_v25 }
 0x1f9   :  { %v453_v30 = vpack.c.bf16 %v442_v28, %v441_v27  ;;  %v937_v31 = vpop.f32.mrb[12].mxu1 }
 0x1fa   :  { %v427_v32 = vadd.f32 %v937_v31, %v738_v52  ;;  %v418_v33 = vpop.f32.mrb[13].mxu1 }
 0x1fb   :  { %v419_v34 = vadd.f32 %v738_v52, %v418_v33  ;;  %v938_v35 = vpop.f32.mrb[14].mxu1  ;;  %963 = vmatprep.mubr.bf16.mxu1 %v453_v30 }
 0x1fc   :  { %v430_v36 = vadd.f32 %v938_v35, %v738_v52  ;;  %v421_v37 = vpop.f32.mrb[15].mxu1  ;;  %964 = vmatmul.mubr.bf16.gmra.mrb[20].mxu1 %v454_v29  ;;  %v447_v39 = vmax.f32 %v427_v32, 0.0 }
 0x1fd   :  { %v422_v38 = vadd.f32 %v738_v52, %v421_v37  ;;  %v445_v41 = vmax.f32 %v419_v34, 0.0 }
 0x1fe   :  { %v448_v40 = vmax.f32 %v430_v36, 0.0 }
 0x1ff   :  { %v446_v42 = vmax.f32 %v422_v38, 0.0 }
 0x200   :  { %v456_v43 = vpack.c.bf16 %v448_v40, %v447_v39 }
 0x201   :  { %v455_v44 = vpack.c.bf16 %v446_v42, %v445_v41 }
 0x203   :  { %967 = vmatprep.mubr.bf16.mxu1 %v455_v44 }
 0x204   :  { %968 = vmatmul.mubr.bf16.gmra.mrb[24].mxu1 %v456_v43 }
 0x2bf   :  { %v957_v45 = vpop.f32.mrb[16].mxu0 }
 0x2c0   :  { %v562_v47 = vpop.f32.mrb[17].mxu0  ;;  %v571_v49 = vadd.f32 %v957_v45, %v751_v46 }
 0x2c1   :  { %v958_v48 = vpop.f32.mrb[18].mxu0  ;;  %v563_v53 = vadd.f32 %v751_v46, %v562_v47 }
 0x2c2   :  { %v574_v50 = vadd.f32 %v958_v48, %v751_v46  ;;  %v565_v51 = vpop.f32.mrb[19].mxu0 }
 0x2c3   :  { %v566_v52 = vadd.f32 %v751_v46, %v565_v51 }
 0x2c4   :  { %v800_v54 = vpack.c.bf16 %v574_v50, %v571_v49 }
 0x2c5   :  { %v795_v55 = vpack.c.bf16 %v566_v52, %v563_v53 }
 0x2c6   :  { %832 = vst [vmem:[#allocation5 + $0x8] sm:$0xff] %v800_v54  }
 0x2c7   :  { %796 = vst [vmem:[#allocation5] sm:$0xff] %v795_v55   ;;  %v961_v56 = vpop.f32.mrb[16].mxu1 }
 0x2c8   :  { %v578_v57 = vpop.f32.mrb[17].mxu1  ;;  %v587_v59 = vadd.f32 %v961_v56, %v751_v46 }
 0x2c9   :  { %v962_v58 = vpop.f32.mrb[18].mxu1  ;;  %v579_v62 = vadd.f32 %v751_v46, %v578_v57 }
 0x2ca   :  { %v590_v60 = vadd.f32 %v962_v58, %v751_v46  ;;  %v581_v61 = vpop.f32.mrb[19].mxu1 }
 0x2cb   :  { %v582_v63 = vadd.f32 %v751_v46, %v581_v61 }
 0x2cc   :  { %v810_v0 = vpack.c.bf16 %v590_v60, %v587_v59 }
 0x2cd   :  { %v805_v1 = vpack.c.bf16 %v582_v63, %v579_v62 }
 0x2ce   :  { %834 = vst [vmem:[#allocation5 + $0x18] sm:$0xff] %v810_v0  }
 0x2cf   :  { %833 = vst [vmem:[#allocation5 + $0x10] sm:$0xff] %v805_v1   ;;  %v965_v2 = vpop.f32.mrb[20].mxu1 }
 0x2d0   :  { %v594_v3 = vpop.f32.mrb[21].mxu1  ;;  %v603_v5 = vadd.f32 %v965_v2, %v751_v46 }
 0x2d1   :  { %v966_v4 = vpop.f32.mrb[22].mxu1  ;;  %v595_v8 = vadd.f32 %v751_v46, %v594_v3 }
 0x2d2   :  { %v606_v6 = vadd.f32 %v966_v4, %v751_v46  ;;  %v597_v7 = vpop.f32.mrb[23].mxu1 }
 0x2d3   :  { %v598_v9 = vadd.f32 %v751_v46, %v597_v7 }
 0x2d4   :  { %v820_v10 = vpack.c.bf16 %v606_v6, %v603_v5 }
 0x2d5   :  { %v815_v11 = vpack.c.bf16 %v598_v9, %v595_v8 }
 0x2d6   :  { %836 = vst [vmem:[#allocation5 + $0x28] sm:$0xff] %v820_v10  }
 0x2d7   :  { %835 = vst [vmem:[#allocation5 + $0x20] sm:$0xff] %v815_v11   ;;  %v969_v12 = vpop.f32.mrb[24].mxu1 }
 0x2d8   :  { %v610_v13 = vpop.f32.mrb[25].mxu1  ;;  %v619_v15 = vadd.f32 %v969_v12, %v751_v46 }
 0x2d9   :  { %v970_v14 = vpop.f32.mrb[26].mxu1  ;;  %v611_v18 = vadd.f32 %v751_v46, %v610_v13 }
 0x2da   :  { %v622_v16 = vadd.f32 %v970_v14, %v751_v46  ;;  %v613_v17 = vpop.f32.mrb[27].mxu1 }
 0x2db   :  { %v614_v19 = vadd.f32 %v751_v46, %v613_v17 }
 0x2dc   :  { %v830_v20 = vpack.c.bf16 %v622_v16, %v619_v15 }
 0x2dd   :  { %v825_v21 = vpack.c.bf16 %v614_v19, %v611_v18 }
 0x2de   :  { %838 = vst [vmem:[#allocation5 + $0x38] sm:$0xff] %v830_v20  }
 0x2df   :  { %837 = vst [vmem:[#allocation5 + $0x30] sm:$0xff] %v825_v21  }
 0x2e0   :  { %1052 = shalt.err (!%p1049_p12)
}
 0x2e1   :  { %s1053_s9 = scalar_lea.hbm %s1216_s6, 1024 }
 0x2e2   :  { %p1054_p13 = scmp.ne.s32.totalorder %s1216_s6, %s1053_s9  ;;  %p1057_p0 = scmp.lt.u32.totalorder %s1053_s9, %s1216_s6 }
 0x2e4   :  { %p1059_p1 = pnand %p1057_p0, %p1054_p13 }
 0x2e6   :  { %1062 = shalt.err (!%p1059_p1)
}
 0x2e7   :  { %716 = dma.vmem_to_hbm [thread:$0]  %s711_s27, 1024, %s1216_s6, [#allocation4], %s1068_s7, %s1068_s7, %s1069_s8  }
 0x2e8   :  { %1065 = dma.done.wait [#allocation4], 1024  }
 0x2e9   :  { %1066 = vsyncadd [#allocation4], 4294966272 }
 0x2ea   :  { %720 = vsyncpa [#allocation3], 1 }
 0x2eb   :  { %721 = vsyncpa [#allocation4], 1 }

</bundles_post_ra>
